<compile_context>
chip_gen: v7x
topology: tpu7x:2x2x1
jax: 0.10.0
libtpu: 0.0.40
codegen_flags: <defaults>
</compile_context>

<pallas_src>
import functools
import math
import sys

import jax
import jax.numpy as jnp
from jax.experimental import pallas as pl
from jax.experimental.pallas import tpu as pltpu


# ----------------------------------------------------------------------------
# Shared helpers
# ----------------------------------------------------------------------------
def _layer_norm(v, g, b, eps=1e-6):
    # BERT-pytorch LayerNorm: unbiased std, eps added to the *std* (not the var).
    n = v.shape[-1]
    mean = jnp.mean(v, axis=-1, keepdims=True)
    var = jnp.sum((v - mean) ** 2, axis=-1, keepdims=True) * (1.0 / (n - 1))
    # Exact divide (not approx reciprocal) so LN error does not compound per layer.
    return (v - mean) / (jnp.sqrt(var) + eps) * g + b


_VMEM_LIMIT = None


def _default_vmem_limit():
    """~85% of physical per-core VMEM (≈54 MiB v7x, ≈108 MiB v5e/v6e)."""
    global _VMEM_LIMIT
    if _VMEM_LIMIT is None:
        limit = 64 * 1024 * 1024
        try:
            cap = int(pltpu.get_tpu_info().vmem_capacity_bytes)
            limit = max(32 * 1024 * 1024, min(int(cap * 0.85), 112 * 1024 * 1024))
        except Exception:  # noqa: BLE001 - conservative fallback on any query failure
            pass
        _VMEM_LIMIT = limit
    return _VMEM_LIMIT


_BUFFERED1_OK = None


def _buffered_weights_supported():
    """One-time probe: can this Pallas/Mosaic build single-buffer grid-invariant
    operands via pipeline_mode=pl.Buffered(1)?  (Decision logged on fallback.)"""
    global _BUFFERED1_OK
    if _BUFFERED1_OK is None:
        def _k(c_ref, x_ref, o_ref):
            o_ref[...] = x_ref[...] + c_ref[...]
        try:
            f = pl.pallas_call(
                _k,
                out_shape=jax.ShapeDtypeStruct((2, 8, 128), jnp.float32),
                grid=(2,),
                in_specs=[
                    pl.BlockSpec((8, 128), lambda b: (0, 0),
                                 pipeline_mode=pl.Buffered(1)),
                    pl.BlockSpec((1, 8, 128), lambda b: (b, 0, 0)),
                ],
                out_specs=pl.BlockSpec((1, 8, 128), lambda b: (b, 0, 0)),
            )
            jax.block_until_ready(
                f(jnp.zeros((8, 128), jnp.float32), jnp.ones((2, 8, 128), jnp.float32)))
            _BUFFERED1_OK = True
        except Exception as e:  # noqa: BLE001
            print(f"UNILM pallas: pl.Buffered(1) weight pinning unavailable "
                  f"({type(e).__name__}); using default double-buffering "
                  f"(Pallas skips re-DMA for unchanged block indices).",
                  file=sys.stderr)
            _BUFFERED1_OK = False
    return _BUFFERED1_OK


def _choose_q_tile(L, n_heads):
    """Query-tile size: keep the (nh, TQ, L) f32 score slab under ~8 MiB."""
    for t in (256, 128, 64, 32):
        if L % t == 0 and n_heads * t * L * 4 <= 8 * 1024 * 1024:
            return t
    for t in (256, 128, 64, 32):
        if L % t == 0:
            return t
    return L


# ----------------------------------------------------------------------------
# Kernel A: pre-norm fused QKV projection + head-major bf16 staging (K^T).
# ----------------------------------------------------------------------------
def qkv_projection_kernel(x_ref, ln1_ref, wqkv_ref, bqkv_ref,
                          q_ref, kt_ref, v_ref, *, n_heads):
    f32, bf16 = jnp.float32, jnp.bfloat16
    x = x_ref[0]                                  # (L, H) f32
    L, H = x.shape
    dk = H // n_heads

    xn = _layer_norm(x, ln1_ref[0], ln1_ref[1])
    qkv = jnp.dot(xn.astype(bf16), wqkv_ref[...],
                  preferred_element_type=f32) + bqkv_ref[0]      # (L, 3H) f32

    # Head-major bf16 staging, done once per (layer, batch element):
    #   q: (nh, L, dk)  -- 1/sqrt(dk) already folded into Wqkv/bqkv on the host
    #   k: (nh, dk, L)  -- pre-transposed so kernel B's score matmul needs no relayout
    #   v: (nh, L, dk)
    for h in range(n_heads):
        q_ref[0, h] = qkv[:, h * dk:(h + 1) * dk].astype(bf16)
        kt_ref[0, h] = qkv[:, H + h * dk:H + (h + 1) * dk].T.astype(bf16)
        v_ref[0, h] = qkv[:, 2 * H + h * dk:2 * H + (h + 1) * dk].astype(bf16)


def run_qkv_projection(x, p, n_heads, *, vmem_limit, pin_weights):
    B, L, H = x.shape
    dk = H // n_heads
    kernel = functools.partial(qkv_projection_kernel, n_heads=n_heads)

    def cspec(shape):
        im = lambda b: (0,) * len(shape)
        if pin_weights:
            return pl.BlockSpec(shape, im, pipeline_mode=pl.Buffered(1))
        return pl.BlockSpec(shape, im)

    flops = int(2 * B * L * H * 3 * H)
    bytes_accessed = int(B * L * H * 4 + 3 * B * L * H * 2
                         + 2 * (H * 3 * H) + 4 * (3 * H + 2 * H))
    cost = pl.CostEstimate(flops=flops, transcendentals=0,
                           bytes_accessed=bytes_accessed)

    out_shapes = (
        jax.ShapeDtypeStruct((B, n_heads, L, dk), jnp.bfloat16),   # q (pre-scaled)
        jax.ShapeDtypeStruct((B, n_heads, dk, L), jnp.bfloat16),   # k^T
        jax.ShapeDtypeStruct((B, n_heads, L, dk), jnp.bfloat16),   # v
    )
    out_specs = (
        pl.BlockSpec((1, n_heads, L, dk), lambda b: (b, 0, 0, 0)),
        pl.BlockSpec((1, n_heads, dk, L), lambda b: (b, 0, 0, 0)),
        pl.BlockSpec((1, n_heads, L, dk), lambda b: (b, 0, 0, 0)),
    )
    return pl.pallas_call(
        kernel,
        out_shape=out_shapes,
        grid=(B,),
        in_specs=[
            pl.BlockSpec((1, L, H), lambda b: (b, 0, 0)),   # x
            cspec((2, H)),                                  # ln1 (g, b)
            cspec((H, 3 * H)),                              # fused Wqkv (bf16)
            cspec((1, 3 * H)),                              # fused bqkv
        ],
        out_specs=out_specs,
        compiler_params=pltpu.CompilerParams(
            dimension_semantics=("parallel",),
            vmem_limit_bytes=vmem_limit),
        cost_estimate=cost,
    )(x, p["ln1"], p["wqkv"], p["bqkv"])


# ----------------------------------------------------------------------------
# Kernel B: query-tiled attention + output projection + pre-norm FFN.
# ----------------------------------------------------------------------------
def attention_ffn_kernel(x_ref, mask_ref, q_ref, kt_ref, v_ref,
                         ln2_ref, woh_ref, bo_ref,
                         w1_ref, b1_ref, w2_ref, b2_ref,
                         out_ref, *, n_heads):
    f32, bf16 = jnp.float32, jnp.bfloat16
    x = x_ref[0]                                   # (TQ, H) f32
    TQ, H = x.shape

    # ---- multi-head attention over this query tile --------------------------
    # Only an (nh, TQ, L) slab is live; scale already folded into Q.
    s = jnp.einsum('hqd,hdk->hqk', q_ref[0], kt_ref[0],
                   preferred_element_type=f32)                    # (nh, TQ, L)
    keep = mask_ref[0] != 0                                       # (TQ, L) int8 cmp
    s = jnp.where(keep[None], s, f32(-1e9))                       # masked_fill
    s = s - jnp.max(s, axis=-1, keepdims=True)
    pr = jnp.exp(s)
    pr = pr * pl.reciprocal(jnp.sum(pr, axis=-1, keepdims=True), approx=True)
    ctx = jnp.einsum('hqk,hkd->hqd', pr.astype(bf16), v_ref[0],
                     preferred_element_type=f32)                  # (nh, TQ, dk)

    # Fused ctx . Wo without concatenating dk-wide head slices: accumulate
    # per-head (TQ,dk)@(dk,H) MXU matmuls into a lane-dense (TQ, H) f32 buffer.
    attn = jnp.zeros((TQ, H), f32)
    for h in range(n_heads):
        attn = attn + jnp.dot(ctx[h].astype(bf16), woh_ref[h],
                              preferred_element_type=f32)
    x1 = x + attn + bo_ref[0]                      # residual (dropout = identity)

    # ---- position-wise feed forward (pre-norm) -------------------------------
    xn2 = _layer_norm(x1, ln2_ref[0], ln2_ref[1])
    hdn = jnp.dot(xn2.astype(bf16), w1_ref[...],
                  preferred_element_type=f32) + b1_ref[0]         # (TQ, 4H) f32
    c = math.sqrt(2.0 / math.pi)
    g = 0.5 * hdn * (1.0 + jnp.tanh(c * (hdn + 0.044715 * hdn * hdn * hdn)))
    ff = jnp.dot(g.astype(bf16), w2_ref[...],
                 preferred_element_type=f32) + b2_ref[0]
    out_ref[0] = (x1 + ff).astype(out_ref.dtype)


def run_attention_ffn(x, mask_i8, q, kt, v, p, n_heads, *, vmem_limit, pin_weights):
    B, L, H = x.shape
    dk = H // n_heads
    Hf = p["w1"].shape[1]
    TQ = _choose_q_tile(L, n_heads)
    nq = L // TQ
    kernel = functools.partial(attention_ffn_kernel, n_heads=n_heads)

    def cspec(shape):
        im = lambda b, t: (0,) * len(shape)
        if pin_weights:
            return pl.BlockSpec(shape, im, pipeline_mode=pl.Buffered(1))
        return pl.BlockSpec(shape, im)

    in_specs = [
        pl.BlockSpec((1, TQ, H), lambda b, t: (b, t, 0)),               # x tile
        pl.BlockSpec((1, TQ, L), lambda b, t: (b, t, 0)),               # int8 mask tile
        pl.BlockSpec((1, n_heads, TQ, dk), lambda b, t: (b, 0, t, 0)),  # q tile
        pl.BlockSpec((1, n_heads, dk, L), lambda b, t: (b, 0, 0, 0)),   # k^T (full seq)
        pl.BlockSpec((1, n_heads, L, dk), lambda b, t: (b, 0, 0, 0)),   # v (full seq)
        cspec((2, H)),                       # ln2 (g, b)
        cspec((n_heads, dk, H)),             # Wo, head-major
        cspec((1, H)),                       # bo
        cspec((H, Hf)), cspec((1, Hf)),      # W1, b1
        cspec((Hf, H)), cspec((1, H)),       # W2, b2
    ]

    flops = int(B * (4 * L * L * H + 2 * L * H * H + 4 * L * H * Hf))
    transcendentals = int(B * (n_heads * L * L + L * Hf))
    bytes_accessed = int(2 * B * L * H * 4                    # x in + out (f32)
                         + B * L * L                          # int8 mask
                         + B * L * H * 2                      # q tiles (bf16)
                         + nq * B * 2 * L * H * 2             # k^T + v per q-tile
                         + 2 * (H * H + 2 * H * Hf)           # bf16 weights
                         + 4 * (2 * H + 2 * H + Hf))          # f32 LN + biases
    cost = pl.CostEstimate(flops=flops, transcendentals=transcendentals,
                           bytes_accessed=bytes_accessed)

    return pl.pallas_call(
        kernel,
        out_shape=jax.ShapeDtypeStruct((B, L, H), jnp.float32),
        grid=(B, nq),
        in_specs=in_specs,
        out_specs=pl.BlockSpec((1, TQ, H), lambda b, t: (b, t, 0)),
        compiler_params=pltpu.CompilerParams(
            dimension_semantics=("parallel", "parallel"),
            vmem_limit_bytes=vmem_limit),
        cost_estimate=cost,
    )(x, mask_i8, q, kt, v,
      p["ln2"], p["wo_heads"], p["bo"], p["w1"], p["b1"], p["w2"], p["b2"])


# ----------------------------------------------------------------------------
# Parameter construction (deterministic, synthetic) and JAX glue.
# ----------------------------------------------------------------------------
def make_params(key, vocab_size, hidden, n_layers, n_heads, max_len):
    keys = jax.random.split(key, 2 + 6 * n_layers)
    ki = iter(keys)
    dk = hidden // n_heads
    scale = 1.0 / math.sqrt(dk)

    tok_emb = jax.random.normal(next(ki), (vocab_size, hidden), jnp.float32) * 0.02
    tok_emb = tok_emb.at[0].set(0.0)                 # padding_idx = 0
    seg_emb = jax.random.normal(next(ki), (3, hidden), jnp.float32) * 0.02
    seg_emb = seg_emb.at[0].set(0.0)                 # padding_idx = 0

    # Sinusoidal positional embedding (non-trainable).
    pos = jnp.arange(max_len, dtype=jnp.float32)[:, None]
    div = jnp.exp(jnp.arange(0, hidden, 2, dtype=jnp.float32)
                  * (-math.log(10000.0) / hidden))
    pe = jnp.zeros((max_len, hidden), jnp.float32)
    pe = pe.at[:, 0::2].set(jnp.sin(pos * div))
    pe = pe.at[:, 1::2].set(jnp.cos(pos * div))

    layers = []
    for _ in range(n_layers):
        def w(shape):
            return jax.random.normal(next(ki), shape, jnp.float32) * 0.02
        wq, wk, wv, wo = (w((hidden, hidden)), w((hidden, hidden)),
                          w((hidden, hidden)), w((hidden, hidden)))
        w1, w2 = w((hidden, 4 * hidden)), w((4 * hidden, hidden))
        layers.append(dict(
            ln1=jnp.stack([jnp.ones((hidden,), jnp.float32),
                           jnp.zeros((hidden,), jnp.float32)], axis=0),
            ln2=jnp.stack([jnp.ones((hidden,), jnp.float32),
                           jnp.zeros((hidden,), jnp.float32)], axis=0),
            # Fused QKV (bf16) with 1/sqrt(dk) folded into the Q columns/bias so the
            # attention scale rides the MXU matmul instead of a VPU multiply.
            wqkv=jnp.concatenate([wq * scale, wk, wv], axis=1).astype(jnp.bfloat16),
            bqkv=jnp.zeros((1, 3 * hidden), jnp.float32),
            # Output projection pre-reshaped head-major so the kernel never has
            # to concatenate dk-wide head slices.
            wo_heads=wo.reshape(n_heads, dk, hidden).astype(jnp.bfloat16),
            bo=jnp.zeros((1, hidden), jnp.float32),
            w1=w1.astype(jnp.bfloat16), b1=jnp.zeros((1, 4 * hidden), jnp.float32),
            w2=w2.astype(jnp.bfloat16), b2=jnp.zeros((1, hidden), jnp.float32),
            raw=dict(wq=wq, wk=wk, wv=wv, wo=wo, w1=w1, w2=w2),
        ))
    return dict(tok_emb=tok_emb, seg_emb=seg_emb, pos_emb=pe, layers=layers)


def unilm_forward(params, x, segment_info, unilm_mask, n_heads):
    B, L = x.shape

    # mask = (x > 0).unsqueeze(1).repeat(1, L, 1).unsqueeze(1) -> key padding mask
    pad_mask = (x > 0)[:, None, :]                               # (B, 1, L)
    # unilm_mask (B, L, 1, L) -> transpose(1, 2) -> (B, 1, L, L)
    uni = jnp.transpose(unilm_mask, (0, 2, 1, 3))[:, 0]          # (B, L, L)
    keep = pad_mask & (uni != 0)                                 # (B, L, L) bool
    mask_i8 = keep.astype(jnp.int8)     # int8: 4x less mask DMA per grid step than f32

    # Embedding gathers + sum stay in plain JAX (dropout is identity in eval).
    h = (params["tok_emb"][x]
         + params["seg_emb"][segment_info]
         + params["pos_emb"][:L][None]).astype(jnp.float32)      # (B, L, H)

    vmem_limit = _default_vmem_limit()
    pin = _buffered_weights_supported()
    for layer_params in params["layers"]:
        q, kt, v = run_qkv_projection(h, layer_params, n_heads,
                                      vmem_limit=vmem_limit, pin_weights=pin)
        h = run_attention_ffn(h, mask_i8, q, kt, v, layer_params, n_heads,
                              vmem_limit=vmem_limit, pin_weights=pin)
    return h


# ----------------------------------------------------------------------------
# Pure-JAX reference (same bf16-rounded weights) for a loose numeric check.
# ----------------------------------------------------------------------------
def unilm_reference(params, x, segment_info, unilm_mask, n_heads):
    B, L = x.shape
    pad_mask = (x > 0)[:, None, :]
    uni = jnp.transpose(unilm_mask, (0, 2, 1, 3))[:, 0]
    keep = (pad_mask & (uni != 0))[:, None, :, :]                # (B, 1, L, L)

    h = (params["tok_emb"][x] + params["seg_emb"][segment_info]
         + params["pos_emb"][:L][None]).astype(jnp.float32)

    def layer_norm(v, g, b):
        mean = jnp.mean(v, axis=-1, keepdims=True)
        var = jnp.sum((v - mean) ** 2, axis=-1, keepdims=True) / (v.shape[-1] - 1)
        return g * (v - mean) / (jnp.sqrt(var) + 1e-6) + b

    def f32w(w):
        return w.astype(jnp.bfloat16).astype(jnp.float32)

    for p in params["layers"]:
        raw = p["raw"]
        H = h.shape[-1]
        dk = H // n_heads
        wq, wk, wv = f32w(raw["wq"]), f32w(raw["wk"]), f32w(raw["wv"])
        wo, w1, w2 = f32w(raw["wo"]), f32w(raw["w1"]), f32w(raw["w2"])

        xn = layer_norm(h, p["ln1"][0], p["ln1"][1])
        q, k, v = xn @ wq, xn @ wk, xn @ wv

        def split(t):
            return t.reshape(B, L, n_heads, dk).transpose(0, 2, 1, 3)

        qh, kh, vh = split(q), split(k), split(v)
        s = jnp.einsum('bhqd,bhkd->bhqk', qh, kh) / math.sqrt(dk)
        s = jnp.where(keep, s, -1e9)
        pattn = jax.nn.softmax(s, axis=-1)
        ctx = jnp.einsum('bhqk,bhkd->bhqd', pattn, vh)
        ctx = ctx.transpose(0, 2, 1, 3).reshape(B, L, H)
        h = h + ctx @ wo + p["bo"][0]

        xn2 = layer_norm(h, p["ln2"][0], p["ln2"][1])
        hdn = xn2 @ w1 + p["b1"][0]
        g = 0.5 * hdn * (1.0 + jnp.tanh(math.sqrt(2.0 / math.pi)
                                        * (hdn + 0.044715 * hdn ** 3)))
        h = h + g @ w2 + p["b2"][0]
    return h


# ----------------------------------------------------------------------------
if __name__ == "__main__":
    VOCAB, HIDDEN, N_LAYERS, N_HEADS = 50, 32, 2, 4
    B, L = 2, 8

    key = jax.random.PRNGKey(0)
    k_param, k_tok, _ = jax.random.split(key, 3)

    params = make_params(k_param, VOCAB, HIDDEN, N_LAYERS, N_HEADS, max_len=64)

    # Token ids with some trailing padding (0) in the second sequence.
    x = jax.random.randint(k_tok, (B, L), 1, VOCAB, dtype=jnp.int32)
    x = x.at[1, 6:].set(0)
    # Segment ids: first half segment 1, second half segment 2; 0 on padding.
    segment_info = jnp.where(jnp.arange(L)[None, :] < L // 2, 1, 2).astype(jnp.int32)
    segment_info = jnp.where(x > 0, segment_info, 0)
    # UNILM mask (B, L, 1, L): full attention within the first half, causal
    # attention for the second half (seq-to-seq style).
    q_idx = jnp.arange(L)[:, None]
    k_idx = jnp.arange(L)[None, :]
    uni2d = ((k_idx < L // 2) | (k_idx <= q_idx)).astype(jnp.int32)   # (L, L)
    unilm_mask = jnp.broadcast_to(uni2d[None, :, None, :], (B, L, 1, L))

    out = unilm_forward(params, x, segment_info, unilm_mask, N_HEADS)
    out = jax.block_until_ready(out)
    assert out.shape == (B, L, HIDDEN) and out.dtype == jnp.float32
    assert bool(jnp.all(jnp.isfinite(out)))

    ref = unilm_reference(params, x, segment_info, unilm_mask, N_HEADS)
    max_err = float(jnp.max(jnp.abs(out - ref)))
    assert max_err < 5e-2, f"max abs error vs reference: {max_err}"

    print("KERNEL_OK")
</pallas_src>

<mosaic_0001>
module attributes {stable_mosaic.version = 11 : i64} {
  func.func @_k(%arg0: i32, %arg1: memref<8x128xf32, #tpu.memory_space<vmem>>, %arg2: memref<1x8x128xf32, #tpu.memory_space<vmem>>, %arg3: memref<1x8x128xf32, #tpu.memory_space<vmem>>) attributes {dimension_semantics = [#tpu.dimension_semantics<arbitrary>], iteration_bounds = array<i64: 2>, scalar_prefetch = 0 : i64, scratch_operands = 0 : i64, tpu.core_type = #tpu.core_type<tc>, window_params = [{pipeline_mode = #tpu.pipeline_mode<synchronous>, transform_indices = @transform_0, window_bounds = array<i64: 8, 128>}, {transform_indices = @transform_1, window_bounds = array<i64: 1, 8, 128>}, {transform_indices = @transform_2, window_bounds = array<i64: 1, 8, 128>}]} {
    %c0 = arith.constant 0 : index
    %c0_0 = arith.constant 0 : index
    %c0_1 = arith.constant 0 : index
    %0 = vector.load %arg2[%c0, %c0_0, %c0_1] : memref<1x8x128xf32, #tpu.memory_space<vmem>>, vector<1x8x128xf32>
    %c0_2 = arith.constant 0 : index
    %c0_3 = arith.constant 0 : index
    %1 = vector.load %arg1[%c0_2, %c0_3] : memref<8x128xf32, #tpu.memory_space<vmem>>, vector<8x128xf32>
    %2 = vector.shape_cast %1 : vector<8x128xf32> to vector<1x8x128xf32>
    %3 = arith.addf %0, %2 : vector<1x8x128xf32>
    %c0_4 = arith.constant 0 : index
    %c0_5 = arith.constant 0 : index
    %c0_6 = arith.constant 0 : index
    %4 = vector.load %arg3[%c0_4, %c0_5, %c0_6] : memref<1x8x128xf32, #tpu.memory_space<vmem>>, vector<1x8x128xf32>
    tpu.vector_store %arg3[%c0_4, %c0_5, %c0_6], %3 {strides = array<i32>} : memref<1x8x128xf32, #tpu.memory_space<vmem>>, vector<1x8x128xf32>,
    return
  }
  func.func @transform_0(%arg0: i32) -> (i32, i32) {
    %c0_i32 = arith.constant 0 : i32
    %c0_i32_0 = arith.constant 0 : i32
    %c0_i32_1 = arith.constant 0 : i32
    return %c0_i32, %c0_i32_0 : i32, i32
  }
  func.func @transform_1(%arg0: i32) -> (i32, i32, i32) {
    %c0_i32 = arith.constant 0 : i32
    %c0_i32_0 = arith.constant 0 : i32
    %c0_i32_1 = arith.constant 0 : i32
    return %arg0, %c0_i32, %c0_i32_0 : i32, i32, i32
  }
  func.func @transform_2(%arg0: i32) -> (i32, i32, i32) {
    %c0_i32 = arith.constant 0 : i32
    %c0_i32_0 = arith.constant 0 : i32
    %c0_i32_1 = arith.constant 0 : i32
    return %arg0, %c0_i32, %c0_i32_0 : i32, i32, i32
  }
}

module attributes {stable_mosaic.version = 11 : i64} {
  func.func @qkv_projection_kernel(%arg0: i32, %arg1: memref<1x8x32xf32, #tpu.memory_space<vmem>>, %arg2: memref<2x32xf32, #tpu.memory_space<vmem>>, %arg3: memref<32x96xbf16, #tpu.memory_space<vmem>>, %arg4: memref<1x96xf32, #tpu.memory_space<vmem>>, %arg5: memref<1x4x8x8xbf16, #tpu.memory_space<vmem>>, %arg6: memref<1x4x8x8xbf16, #tpu.memory_space<vmem>>, %arg7: memref<1x4x8x8xbf16, #tpu.memory_space<vmem>>) attributes {dimension_semantics = [#tpu.dimension_semantics<parallel>], iteration_bounds = array<i64: 2>, scalar_prefetch = 0 : i64, scratch_operands = 0 : i64, tpu.core_type = #tpu.core_type<tc>, window_params = [{transform_indices = @transform_0, window_bounds = array<i64: 1, 8, 32>}, {pipeline_mode = #tpu.pipeline_mode<synchronous>, transform_indices = @transform_1, window_bounds = array<i64: 2, 32>}, {pipeline_mode = #tpu.pipeline_mode<synchronous>, transform_indices = @transform_2, window_bounds = array<i64: 32, 96>}, {pipeline_mode = #tpu.pipeline_mode<synchronous>, transform_indices = @transform_3, window_bounds = array<i64: 1, 96>}, {transform_indices = @transform_4, window_bounds = array<i64: 1, 4, 8, 8>}, {transform_indices = @transform_5, window_bounds = array<i64: 1, 4, 8, 8>}, {transform_indices = @transform_6, window_bounds = array<i64: 1, 4, 8, 8>}]} {
    %c0 = arith.constant 0 : index
    %c0_0 = arith.constant 0 : index
    %c0_1 = arith.constant 0 : index
    %0 = vector.load %arg1[%c0, %c0_0, %c0_1] : memref<1x8x32xf32, #tpu.memory_space<vmem>>, vector<1x8x32xf32>
    %1 = vector.shape_cast %0 : vector<1x8x32xf32> to vector<8x32xf32>
    %c0_2 = arith.constant 0 : index
    %c0_3 = arith.constant 0 : index
    %2 = vector.load %arg2[%c0_2, %c0_3] : memref<2x32xf32, #tpu.memory_space<vmem>>, vector<1x32xf32>
    %3 = vector.shape_cast %2 : vector<1x32xf32> to vector<32xf32>
    %c1 = arith.constant 1 : index
    %c0_4 = arith.constant 0 : index
    %4 = vector.load %arg2[%c1, %c0_4] : memref<2x32xf32, #tpu.memory_space<vmem>>, vector<1x32xf32>
    %5 = vector.shape_cast %4 : vector<1x32xf32> to vector<32xf32>
    %cst = arith.constant dense<0.000000e+00> : vector<8xf32>
    %6 = vector.multi_reduction <add>, %1, %cst [1] : vector<8x32xf32> to vector<8xf32>
    %7 = vector.shape_cast %6 : vector<8xf32> to vector<8x1xf32>
    %cst_5 = arith.constant 3.200000e+01 : f32
    %8 = vector.broadcast %cst_5 : f32 to vector<8x1xf32>
    %9 = arith.divf %7, %8 : vector<8x1xf32>
    %10 = vector.broadcast %9 : vector<8x1xf32> to vector<8x32xf32>
    %11 = arith.subf %1, %10 : vector<8x32xf32>
    %12 = arith.mulf %11, %11 : vector<8x32xf32>
    %cst_6 = arith.constant dense<0.000000e+00> : vector<8xf32>
    %13 = vector.multi_reduction <add>, %12, %cst_6 [1] : vector<8x32xf32> to vector<8xf32>
    %14 = vector.shape_cast %13 : vector<8xf32> to vector<8x1xf32>
    %cst_7 = arith.constant 0.0322580636 : f32
    %15 = vector.broadcast %cst_7 : f32 to vector<8x1xf32>
    %16 = arith.mulf %14, %15 : vector<8x1xf32>
    %17 = vector.broadcast %9 : vector<8x1xf32> to vector<8x32xf32>
    %18 = arith.subf %1, %17 : vector<8x32xf32>
    %19 = math.sqrt %16 : vector<8x1xf32>
    %cst_8 = arith.constant 9.99999997E-7 : f32
    %20 = vector.broadcast %cst_8 : f32 to vector<8x1xf32>
    %21 = arith.addf %19, %20 : vector<8x1xf32>
    %22 = vector.broadcast %21 : vector<8x1xf32> to vector<8x32xf32>
    %23 = arith.divf %18, %22 : vector<8x32xf32>
    %24 = vector.shape_cast %3 : vector<32xf32> to vector<1x32xf32>
    %25 = vector.broadcast %24 : vector<1x32xf32> to vector<8x32xf32>
    %26 = arith.mulf %23, %25 : vector<8x32xf32>
    %27 = vector.shape_cast %5 : vector<32xf32> to vector<1x32xf32>
    %28 = vector.broadcast %27 : vector<1x32xf32> to vector<8x32xf32>
    %29 = arith.addf %26, %28 : vector<8x32xf32>
    %30 = arith.truncf %29 : vector<8x32xf32> to vector<8x32xbf16>
    %c0_9 = arith.constant 0 : index
    %c0_10 = arith.constant 0 : index
    %31 = vector.load %arg3[%c0_9, %c0_10] : memref<32x96xbf16, #tpu.memory_space<vmem>>, vector<32x96xbf16>
    %cst_11 = arith.constant dense<0.000000e+00> : vector<8x96xf32>
    %32 = tpu.matmul %30, %31, %cst_11 {dimension_numbers = #tpu.dot_dimension_numbers<[1], [0], [0], [1], [0, 0, 1, 1], [], []>} : vector<8x32xbf16>, vector<32x96xbf16>, vector<8x96xf32> -> vector<8x96xf32>
    %c0_12 = arith.constant 0 : index
    %c0_13 = arith.constant 0 : index
    %33 = vector.load %arg4[%c0_12, %c0_13] : memref<1x96xf32, #tpu.memory_space<vmem>>, vector<1x96xf32>
    %34 = vector.shape_cast %33 : vector<1x96xf32> to vector<96xf32>
    %35 = vector.shape_cast %34 : vector<96xf32> to vector<1x96xf32>
    %36 = vector.broadcast %35 : vector<1x96xf32> to vector<8x96xf32>
    %37 = arith.addf %32, %36 : vector<8x96xf32>
    %38 = vector.extract_strided_slice %37 {offsets = [0, 0], sizes = [8, 8], strides = [1, 1]} : vector<8x96xf32> to vector<8x8xf32>
    %39 = arith.truncf %38 : vector<8x8xf32> to vector<8x8xbf16>
    %c0_14 = arith.constant 0 : index
    %c0_15 = arith.constant 0 : index
    %c0_16 = arith.constant 0 : index
    %c0_17 = arith.constant 0 : index
    %40 = vector.load %arg5[%c0_14, %c0_15, %c0_16, %c0_17] : memref<1x4x8x8xbf16, #tpu.memory_space<vmem>>, vector<1x1x8x8xbf16>
    %41 = vector.shape_cast %40 : vector<1x1x8x8xbf16> to vector<8x8xbf16>
    %42 = vector.shape_cast %39 : vector<8x8xbf16> to vector<1x1x8x8xbf16>
    tpu.vector_store %arg5[%c0_14, %c0_15, %c0_16, %c0_17], %42 {strides = array<i32>} : memref<1x4x8x8xbf16, #tpu.memory_space<vmem>>, vector<1x1x8x8xbf16>,
    %43 = vector.extract_strided_slice %37 {offsets = [0, 32], sizes = [8, 8], strides = [1, 1]} : vector<8x96xf32> to vector<8x8xf32>
    %44 = tpu.transpose %43, [1, 0] : vector<8x8xf32> -> vector<8x8xf32>
    %45 = arith.truncf %44 : vector<8x8xf32> to vector<8x8xbf16>
    %c0_18 = arith.constant 0 : index
    %c0_19 = arith.constant 0 : index
    %c0_20 = arith.constant 0 : index
    %c0_21 = arith.constant 0 : index
    %46 = vector.load %arg6[%c0_18, %c0_19, %c0_20, %c0_21] : memref<1x4x8x8xbf16, #tpu.memory_space<vmem>>, vector<1x1x8x8xbf16>
    %47 = vector.shape_cast %46 : vector<1x1x8x8xbf16> to vector<8x8xbf16>
    %48 = vector.shape_cast %45 : vector<8x8xbf16> to vector<1x1x8x8xbf16>
    tpu.vector_store %arg6[%c0_18, %c0_19, %c0_20, %c0_21], %48 {strides = array<i32>} : memref<1x4x8x8xbf16, #tpu.memory_space<vmem>>, vector<1x1x8x8xbf16>,
    %49 = vector.extract_strided_slice %37 {offsets = [0, 64], sizes = [8, 8], strides = [1, 1]} : vector<8x96xf32> to vector<8x8xf32>
    %50 = arith.truncf %49 : vector<8x8xf32> to vector<8x8xbf16>
    %c0_22 = arith.constant 0 : index
    %c0_23 = arith.constant 0 : index
    %c0_24 = arith.constant 0 : index
    %c0_25 = arith.constant 0 : index
    %51 = vector.load %arg7[%c0_22, %c0_23, %c0_24, %c0_25] : memref<1x4x8x8xbf16, #tpu.memory_space<vmem>>, vector<1x1x8x8xbf16>
    %52 = vector.shape_cast %51 : vector<1x1x8x8xbf16> to vector<8x8xbf16>
    %53 = vector.shape_cast %50 : vector<8x8xbf16> to vector<1x1x8x8xbf16>
    tpu.vector_store %arg7[%c0_22, %c0_23, %c0_24, %c0_25], %53 {strides = array<i32>} : memref<1x4x8x8xbf16, #tpu.memory_space<vmem>>, vector<1x1x8x8xbf16>,
    %54 = vector.extract_strided_slice %37 {offsets = [0, 8], sizes = [8, 8], strides = [1, 1]} : vector<8x96xf32> to vector<8x8xf32>
    %55 = arith.truncf %54 : vector<8x8xf32> to vector<8x8xbf16>
    %c0_26 = arith.constant 0 : index
    %c1_27 = arith.constant 1 : index
    %c0_28 = arith.constant 0 : index
    %c0_29 = arith.constant 0 : index
    %56 = vector.load %arg5[%c0_26, %c1_27, %c0_28, %c0_29] : memref<1x4x8x8xbf16, #tpu.memory_space<vmem>>, vector<1x1x8x8xbf16>
    %57 = vector.shape_cast %56 : vector<1x1x8x8xbf16> to vector<8x8xbf16>
    %58 = vector.shape_cast %55 : vector<8x8xbf16> to vector<1x1x8x8xbf16>
    tpu.vector_store %arg5[%c0_26, %c1_27, %c0_28, %c0_29], %58 {strides = array<i32>} : memref<1x4x8x8xbf16, #tpu.memory_space<vmem>>, vector<1x1x8x8xbf16>,
    %59 = vector.extract_strided_slice %37 {offsets = [0, 40], sizes = [8, 8], strides = [1, 1]} : vector<8x96xf32> to vector<8x8xf32>
    %60 = tpu.transpose %59, [1, 0] : vector<8x8xf32> -> vector<8x8xf32>
    %61 = arith.truncf %60 : vector<8x8xf32> to vector<8x8xbf16>
    %c0_30 = arith.constant 0 : index
    %c1_31 = arith.constant 1 : index
    %c0_32 = arith.constant 0 : index
    %c0_33 = arith.constant 0 : index
    %62 = vector.load %arg6[%c0_30, %c1_31, %c0_32, %c0_33] : memref<1x4x8x8xbf16, #tpu.memory_space<vmem>>, vector<1x1x8x8xbf16>
    %63 = vector.shape_cast %62 : vector<1x1x8x8xbf16> to vector<8x8xbf16>
    %64 = vector.shape_cast %61 : vector<8x8xbf16> to vector<1x1x8x8xbf16>
    tpu.vector_store %arg6[%c0_30, %c1_31, %c0_32, %c0_33], %64 {strides = array<i32>} : memref<1x4x8x8xbf16, #tpu.memory_space<vmem>>, vector<1x1x8x8xbf16>,
    %65 = vector.extract_strided_slice %37 {offsets = [0, 72], sizes = [8, 8], strides = [1, 1]} : vector<8x96xf32> to vector<8x8xf32>
    %66 = arith.truncf %65 : vector<8x8xf32> to vector<8x8xbf16>
    %c0_34 = arith.constant 0 : index
    %c1_35 = arith.constant 1 : index
    %c0_36 = arith.constant 0 : index
    %c0_37 = arith.constant 0 : index
    %67 = vector.load %arg7[%c0_34, %c1_35, %c0_36, %c0_37] : memref<1x4x8x8xbf16, #tpu.memory_space<vmem>>, vector<1x1x8x8xbf16>
    %68 = vector.shape_cast %67 : vector<1x1x8x8xbf16> to vector<8x8xbf16>
    %69 = vector.shape_cast %66 : vector<8x8xbf16> to vector<1x1x8x8xbf16>
    tpu.vector_store %arg7[%c0_34, %c1_35, %c0_36, %c0_37], %69 {strides = array<i32>} : memref<1x4x8x8xbf16, #tpu.memory_space<vmem>>, vector<1x1x8x8xbf16>,
    %70 = vector.extract_strided_slice %37 {offsets = [0, 16], sizes = [8, 8], strides = [1, 1]} : vector<8x96xf32> to vector<8x8xf32>
    %71 = arith.truncf %70 : vector<8x8xf32> to vector<8x8xbf16>
    %c0_38 = arith.constant 0 : index
    %c2 = arith.constant 2 : index
    %c0_39 = arith.constant 0 : index
    %c0_40 = arith.constant 0 : index
    %72 = vector.load %arg5[%c0_38, %c2, %c0_39, %c0_40] : memref<1x4x8x8xbf16, #tpu.memory_space<vmem>>, vector<1x1x8x8xbf16>
    %73 = vector.shape_cast %72 : vector<1x1x8x8xbf16> to vector<8x8xbf16>
    %74 = vector.shape_cast %71 : vector<8x8xbf16> to vector<1x1x8x8xbf16>
    tpu.vector_store %arg5[%c0_38, %c2, %c0_39, %c0_40], %74 {strides = array<i32>} : memref<1x4x8x8xbf16, #tpu.memory_space<vmem>>, vector<1x1x8x8xbf16>,
    %75 = vector.extract_strided_slice %37 {offsets = [0, 48], sizes = [8, 8], strides = [1, 1]} : vector<8x96xf32> to vector<8x8xf32>
    %76 = tpu.transpose %75, [1, 0] : vector<8x8xf32> -> vector<8x8xf32>
    %77 = arith.truncf %76 : vector<8x8xf32> to vector<8x8xbf16>
    %c0_41 = arith.constant 0 : index
    %c2_42 = arith.constant 2 : index
    %c0_43 = arith.constant 0 : index
    %c0_44 = arith.constant 0 : index
    %78 = vector.load %arg6[%c0_41, %c2_42, %c0_43, %c0_44] : memref<1x4x8x8xbf16, #tpu.memory_space<vmem>>, vector<1x1x8x8xbf16>
    %79 = vector.shape_cast %78 : vector<1x1x8x8xbf16> to vector<8x8xbf16>
    %80 = vector.shape_cast %77 : vector<8x8xbf16> to vector<1x1x8x8xbf16>
    tpu.vector_store %arg6[%c0_41, %c2_42, %c0_43, %c0_44], %80 {strides = array<i32>} : memref<1x4x8x8xbf16, #tpu.memory_space<vmem>>, vector<1x1x8x8xbf16>,
    %81 = vector.extract_strided_slice %37 {offsets = [0, 80], sizes = [8, 8], strides = [1, 1]} : vector<8x96xf32> to vector<8x8xf32>
    %82 = arith.truncf %81 : vector<8x8xf32> to vector<8x8xbf16>
    %c0_45 = arith.constant 0 : index
    %c2_46 = arith.constant 2 : index
    %c0_47 = arith.constant 0 : index
    %c0_48 = arith.constant 0 : index
    %83 = vector.load %arg7[%c0_45, %c2_46, %c0_47, %c0_48] : memref<1x4x8x8xbf16, #tpu.memory_space<vmem>>, vector<1x1x8x8xbf16>
    %84 = vector.shape_cast %83 : vector<1x1x8x8xbf16> to vector<8x8xbf16>
    %85 = vector.shape_cast %82 : vector<8x8xbf16> to vector<1x1x8x8xbf16>
    tpu.vector_store %arg7[%c0_45, %c2_46, %c0_47, %c0_48], %85 {strides = array<i32>} : memref<1x4x8x8xbf16, #tpu.memory_space<vmem>>, vector<1x1x8x8xbf16>,
    %86 = vector.extract_strided_slice %37 {offsets = [0, 24], sizes = [8, 8], strides = [1, 1]} : vector<8x96xf32> to vector<8x8xf32>
    %87 = arith.truncf %86 : vector<8x8xf32> to vector<8x8xbf16>
    %c0_49 = arith.constant 0 : index
    %c3 = arith.constant 3 : index
    %c0_50 = arith.constant 0 : index
    %c0_51 = arith.constant 0 : index
    %88 = vector.load %arg5[%c0_49, %c3, %c0_50, %c0_51] : memref<1x4x8x8xbf16, #tpu.memory_space<vmem>>, vector<1x1x8x8xbf16>
    %89 = vector.shape_cast %88 : vector<1x1x8x8xbf16> to vector<8x8xbf16>
    %90 = vector.shape_cast %87 : vector<8x8xbf16> to vector<1x1x8x8xbf16>
    tpu.vector_store %arg5[%c0_49, %c3, %c0_50, %c0_51], %90 {strides = array<i32>} : memref<1x4x8x8xbf16, #tpu.memory_space<vmem>>, vector<1x1x8x8xbf16>,
    %91 = vector.extract_strided_slice %37 {offsets = [0, 56], sizes = [8, 8], strides = [1, 1]} : vector<8x96xf32> to vector<8x8xf32>
    %92 = tpu.transpose %91, [1, 0] : vector<8x8xf32> -> vector<8x8xf32>
    %93 = arith.truncf %92 : vector<8x8xf32> to vector<8x8xbf16>
    %c0_52 = arith.constant 0 : index
    %c3_53 = arith.constant 3 : index
    %c0_54 = arith.constant 0 : index
    %c0_55 = arith.constant 0 : index
    %94 = vector.load %arg6[%c0_52, %c3_53, %c0_54, %c0_55] : memref<1x4x8x8xbf16, #tpu.memory_space<vmem>>, vector<1x1x8x8xbf16>
    %95 = vector.shape_cast %94 : vector<1x1x8x8xbf16> to vector<8x8xbf16>
    %96 = vector.shape_cast %93 : vector<8x8xbf16> to vector<1x1x8x8xbf16>
    tpu.vector_store %arg6[%c0_52, %c3_53, %c0_54, %c0_55], %96 {strides = array<i32>} : memref<1x4x8x8xbf16, #tpu.memory_space<vmem>>, vector<1x1x8x8xbf16>,
    %97 = vector.extract_strided_slice %37 {offsets = [0, 88], sizes = [8, 8], strides = [1, 1]} : vector<8x96xf32> to vector<8x8xf32>
    %98 = arith.truncf %97 : vector<8x8xf32> to vector<8x8xbf16>
    %c0_56 = arith.constant 0 : index
    %c3_57 = arith.constant 3 : index
    %c0_58 = arith.constant 0 : index
    %c0_59 = arith.constant 0 : index
    %99 = vector.load %arg7[%c0_56, %c3_57, %c0_58, %c0_59] : memref<1x4x8x8xbf16, #tpu.memory_space<vmem>>, vector<1x1x8x8xbf16>
    %100 = vector.shape_cast %99 : vector<1x1x8x8xbf16> to vector<8x8xbf16>
    %101 = vector.shape_cast %98 : vector<8x8xbf16> to vector<1x1x8x8xbf16>
    tpu.vector_store %arg7[%c0_56, %c3_57, %c0_58, %c0_59], %101 {strides = array<i32>} : memref<1x4x8x8xbf16, #tpu.memory_space<vmem>>, vector<1x1x8x8xbf16>,
    return
  }
  func.func @transform_0(%arg0: i32) -> (i32, i32, i32) {
    %c0_i32 = arith.constant 0 : i32
    %c0_i32_0 = arith.constant 0 : i32
    %c0_i32_1 = arith.constant 0 : i32
    return %arg0, %c0_i32, %c0_i32_0 : i32, i32, i32
  }
  func.func @transform_1(%arg0: i32) -> (i32, i32) {
    %c0_i32 = arith.constant 0 : i32
    %c0_i32_0 = arith.constant 0 : i32
    %c0_i32_1 = arith.constant 0 : i32
    return %c0_i32, %c0_i32_0 : i32, i32
  }
  func.func @transform_2(%arg0: i32) -> (i32, i32) {
    %c0_i32 = arith.constant 0 : i32
    %c0_i32_0 = arith.constant 0 : i32
    %c0_i32_1 = arith.constant 0 : i32
    return %c0_i32, %c0_i32_0 : i32, i32
  }
  func.func @transform_3(%arg0: i32) -> (i32, i32) {
    %c0_i32 = arith.constant 0 : i32
    %c0_i32_0 = arith.constant 0 : i32
    %c0_i32_1 = arith.constant 0 : i32
    return %c0_i32, %c0_i32_0 : i32, i32
  }
  func.func @transform_4(%arg0: i32) -> (i32, i32, i32, i32) {
    %c0_i32 = arith.constant 0 : i32
    %c0_i32_0 = arith.constant 0 : i32
    %c0_i32_1 = arith.constant 0 : i32
    %c0_i32_2 = arith.constant 0 : i32
    return %arg0, %c0_i32, %c0_i32_0, %c0_i32_1 : i32, i32, i32, i32
  }
  func.func @transform_5(%arg0: i32) -> (i32, i32, i32, i32) {
    %c0_i32 = arith.constant 0 : i32
    %c0_i32_0 = arith.constant 0 : i32
    %c0_i32_1 = arith.constant 0 : i32
    %c0_i32_2 = arith.constant 0 : i32
    return %arg0, %c0_i32, %c0_i32_0, %c0_i32_1 : i32, i32, i32, i32
  }
  func.func @transform_6(%arg0: i32) -> (i32, i32, i32, i32) {
    %c0_i32 = arith.constant 0 : i32
    %c0_i32_0 = arith.constant 0 : i32
    %c0_i32_1 = arith.constant 0 : i32
    %c0_i32_2 = arith.constant 0 : i32
    return %arg0, %c0_i32, %c0_i32_0, %c0_i32_1 : i32, i32, i32, i32
  }
}

</mosaic_0001>

<bundles_post_ra>
// kernel: tpu_custom_call.1
= control target key start
LH: loop header
LB: loop body
LE: loop exit
PB: predicated region body
PF: predicated region fallthrough
CT: control target
= control target key end

     0   :  { %7 = vsyncpa [#allocation3], 0  ;;  %s692_s0 = inlined_call_operand.hbm [shape: f32[8,128], index: 0, kind: input, shape index: {}]   ;;  %s693_s1 = inlined_call_operand.hbm [shape: f32[2,8,128], index: 1, kind: input, shape index: {}]   ;;  %s694_s2 = inlined_call_operand.hbm [shape: f32[2,8,128], index: 2, kind: output, shape index: {}]  }
   0x1   :  { %8 = vsyncpa [#allocation6], 0 }
   0x2   :  { %10 = vsyncpa [#allocation6 + $0x1], 0 }
   0x3   :  { %11 = vsyncpa [#allocation4], 0 }
   0x4   :  { %13 = vsyncpa [#allocation4 + $0x1], 0  ;;  %s491_s9 = smov 0   ;;  %s493_s10 = smov 0  }
   0x5   :  { %s495_s11 = smov 0   ;;  %s497_s12 = smov 0  }
   0x6 LB: > { %s512_s13 = sadd.s32 4294967295, %s471_s12   ;;  %s272_s14 = sadd.s32 4294967294, %s471_s12   ;;  %s471_s12 = sphi %s497_s12, %s718_s12   ;;  %s467_s11 = sphi %s495_s11, %s717_s11   ;;  %s463_s10 = sphi %s493_s10, %s716_s10   ;;  %s459_s9 = sphi %s491_s9, %s715_s9  }
   0x7   : > { %p60_p0 = scmp.ne.s32.totalorder %s463_s10, %s459_s9  ;;  %p695_p1 = scmp.eq.s32.totalorder %s512_s13, 0 }
   0x8   : > { %p90_p3 = scmp.eq.s32.totalorder %s272_s14, 1  ;;  %p273_p5 = scmp.ge.s32.totalorder %s471_s12, 1 }
   0x9   : > { %p521_p4 = por %p695_p1, %p60_p0  ;;  %p97_p7 = scmp.lt.s32.totalorder %s471_s12, 3 }
   0xa   : > { %p526_p6 = por %p90_p3, %p60_p0  ;;  %s473_s18 = smov [#allocation2]  }
   0xb   : > { %s698_s15 = scalar_select %p521_p4, 1, 0 }
   0xc   : > { %s699_s16 = scalar_select %p526_p6, 1, 0 }
   0xd   : > { %p531_p8 = pnand %p273_p5, %p97_p7  ;;  %s110_s19 = sshll.u32 %s473_s18, 4  ;;  %s111_s19 = int_to_ptr.vmem [resolvable:$true] %s110_s19 }
   0xe   : > { %s539_s20 = sadd.s32 1, %s471_s12   ;;  %s47_s24 = sadd.s32 1, %s467_s11 }
   0xf   : > { %s700_s17 = scalar_select %p531_p8, 1, 0 }
  0x10   : > { %p294_p10 = pneg %p531_p8  ;;  %s44_s22 = ssub.s32 %s471_s12, %s539_s20 }
  0x11   : > { %p549_p12 = scmp.eq.s32.totalorder %s44_s22, 0  ;;  %s343_s27 = scalar_lea.hbm %s692_s0, 128 }
  0x12   : > { %p543_p11 = pnand %p294_p10, %p695_p1  ;;  %p344_p0 = scmp.ne.s32.totalorder %s692_s0, %s343_s27 }
  0x13   : > { %s702_s23 = scalar_select %p549_p12, 1, 0 }
  0x14   : > { %p345_p3 = pneg %p543_p11  ;;  %p350_p10 = scmp.lt.u32.totalorder %s343_s27, %s692_s0 }
  0x16   : > { %p346_p5 = pnand %p345_p3, %p344_p0 }
  0x18   : > { %p347_p7 = pneg %p346_p5 }
  0x1a   : > { %p352_p9 = pnand %p350_p10, %p347_p7 }
  0x1c   : > { %355 = shalt.err (!%p352_p9)
}
  0x1d   : > { %s356_s4 = scalar_lea.vmem %s111_s19, 128  ;;  %p364_p6 = scmp.lt.s32.totalorder %s111_s19, %s111_s19 }
  0x1e   : > { %p357_p1 = scmp.ne.s32.totalorder %s111_s19, %s356_s4  ;;  %p365_p4 = scmp.lt.s32.totalorder %s356_s4, %s356_s4 }
  0x20   : > { %p359_p2 = pnand %p357_p1, %p345_p3  ;;  %p366_p8 = por %p365_p4, %p364_p6 }
  0x22   : > { %p360_p13 = pneg %p359_p2 }
  0x24   : > { %p367_p12 = pnand %p366_p8, %p360_p13 }
  0x26   : > { %370 = shalt.err (!%p367_p12)
}
  0x27   : > { %297 = dma.hbm_to_vmem [thread:$0]  (!%p543_p11), %s692_s0, 128, %s111_s19, [#allocation3]  }
  0x28   : > { %p703_p1 = scmp.ne.s32.totalorder %s702_s23, 0  ;;  %p55_p2 = scmp.eq.s32.totalorder %s471_s12, 0 }
  0x29   : > { %p704_p4 = scmp.ne.s32.totalorder %s467_s11, %s463_s10  ;;  %p705_p6 = scmp.eq.s32.totalorder %s512_s13, 1 }
  0x2a   : > { %s575_s7 = scalar_select %p703_p1, %s467_s11, %s47_s24  }
  0x2b   : > { %p583_p8 = por %p705_p6, %p704_p4  ;;  %p307_p9 = scmp.lt.s32.totalorder %s471_s12, 2 }
  0x2c   : > { %s121_s14 = sand.u32 1, %s467_s11   ;;  %p707_p12 = pmov %p704_p4 }
  0x2d   : > { %s276_s18 = sshll.u32 %s121_s14, 3  ;;  %s277_s21 = sshll.u32 %s471_s12, 7 }
  0x2e   : > { %p56_p13 = por %p55_p2, %p707_p12  ;;  %s596_s19 = scalar_lea.hbm %s693_s1, %s277_s21 }
  0x2f   : > { %s125_s23 = scalar_lea.vmem [#allocation5], %s276_s18  ;;  %s122_s27 = scalar_lea.sflag [#allocation6], %s121_s14 }
  0x30   : > { %s132_s24 = sshll.u32 %s125_s23, 4  ;;  %p598_p11 = pnand %p307_p9, %p56_p13  ;;  %s602_s24 = int_to_ptr.vmem [resolvable:$true] %s132_s24 }
  0x31   : > { %s371_s28 = scalar_lea.hbm %s596_s19, 128  ;;  %s376_s3 = scalar_lea.hbm %s693_s1, 256 }
  0x32   : > { %p372_p0 = scmp.ne.s32.totalorder %s596_s19, %s371_s28  ;;  %p373_p3 = pneg %p598_p11 }
  0x33   : > { %p377_p10 = scmp.lt.u32.totalorder %s596_s19, %s693_s1  ;;  %p378_p1 = scmp.lt.u32.totalorder %s376_s3, %s371_s28 }
  0x34   : > { %p374_p5 = pnand %p373_p3, %p372_p0  ;;  %p380_p4 = scmp.lt.u32.totalorder %s371_s28, %s596_s19 }
  0x35   : > { %p379_p2 = por %p378_p1, %p377_p10 }
  0x36   : > { %p375_p7 = pneg %p374_p5 }
  0x37   : > { %p381_p6 = por %p380_p4, %p379_p2 }
  0x39   : > { %p382_p9 = pnand %p381_p6, %p375_p7 }
  0x3b   : > { %385 = shalt.err (!%p382_p9)
}
  0x3c   : > { %s386_s6 = scalar_lea.vmem %s602_s24, 128  ;;  %s474_s14 = smov [#allocation5]  }
  0x3d   : > { %p387_p12 = scmp.ne.s32.totalorder %s602_s24, %s386_s6  ;;  %s391_s18 = sshll.u32 %s474_s14, 4  ;;  %s392_s18 = int_to_ptr.vmem [resolvable:$false] %s391_s18 }
  0x3e   : > { %s393_s21 = scalar_lea.vmem %s392_s18, 256  ;;  %p394_p5 = scmp.lt.s32.totalorder %s602_s24, %s392_s18 }
  0x3f   : > { %p389_p13 = pnand %p387_p12, %p373_p3  ;;  %p395_p10 = scmp.lt.s32.totalorder %s393_s21, %s386_s6 }
  0x41   : > { %p390_p0 = pneg %p389_p13  ;;  %p396_p1 = por %p395_p10, %p394_p5 }
  0x43   : > { %p397_p2 = pnand %p396_p1, %p390_p0 }
  0x45   : > { %400 = shalt.err (!%p397_p2)
}
  0x46   : > { %301 = dma.hbm_to_vmem [thread:$0]  (!%p598_p11), %s596_s19, 128, %s602_s24, %s122_s27  }
  0x47   : > { %p709_p7 = scmp.ne.s32.totalorder %s700_s17, 0 }
  0x48   : > { %p710_p3 = scmp.eq.s32.totalorder (!%p709_p7), %s512_s13, 0 }
  0x49   : > { %141 = sbr.rel (%p709_p7) target bundleno = 110 (0x6e), region = 28 }
  0x50   : > { %446 = dma.done.wait (%p710_p3), [#allocation3], 128   ;;  %p711_p4 = pmov %p710_p3 }
  0x51   : > { %s636_s22 = sand.u32 1, %s463_s10   ;;  %p712_p6 = scmp.ne.s32.totalorder %s698_s15, 0 }
  0x52   : > { %448 = vsyncadd (%p711_p4), [#allocation3], 4294967168  ;;  %s280_s25 = sshll.u32 %s636_s22, 3  ;;  %s148_s23 = scalar_lea.sflag [#allocation6], %s636_s22 }
  0x53   : > { %s151_s26 = scalar_lea.vmem [#allocation5], %s280_s25 }
  0x54   : > { %450 = dma.done.wait (%p712_p6), %s148_s23, 128  }
  0x55   : > { %452 = vsyncadd (%p712_p6), %s148_s23, 4294967168  ;;  %s171_s17 = scalar_lea.vmem [#allocation7], %s280_s25  ;;  %s283_s24 = sshll.u32 %s512_s13, 7  ;;  %v172_v0 = vld [vmem:[%s151_s26] sm:$0xff]  ;;  %v173_v1 = vld [vmem:[#allocation2] sm:$0xff] }
  0x56   : > { %s190_s19 = sshll.u32 %s171_s17, 4  ;;  %v174_v2 = vadd.f32 %v173_v1, %v172_v0  ;;  %s650_s29 = scalar_lea.hbm %s694_s2, %s283_s24  ;;  %s645_s19 = int_to_ptr.vmem [resolvable:$true] %s190_s19 }
  0x57   : > { %s177_s15 = scalar_lea.sflag [#allocation4], %s636_s22  ;;  %s401_s30 = scalar_lea.vmem %s645_s19, 128 }
  0x58   : > { %175 = vst [vmem:[%s171_s17] sm:$0xff] %v174_v2  ;;  %p402_p11 = scmp.ne.s32.totalorder %s645_s19, %s401_s30  ;;  %s475_s13 = smov [#allocation7]  }
  0x59   : > { %s405_s3 = sshll.u32 %s475_s13, 4  ;;  %s406_s3 = int_to_ptr.vmem [resolvable:$false] %s405_s3 }
  0x5a   : > { %p403_p9 = pnand %p402_p11, %p583_p8  ;;  %s407_s4 = scalar_lea.vmem %s406_s3, 256 }
  0x5b   : > { %p408_p13 = scmp.lt.s32.totalorder %s645_s19, %s406_s3  ;;  %p409_p0 = scmp.lt.s32.totalorder %s407_s4, %s401_s30 }
  0x5c   : > { %p404_p12 = pneg %p403_p9 }
  0x5d   : > { %p410_p5 = por %p409_p0, %p408_p13 }
  0x5f   : > { %p411_p10 = pnand %p410_p5, %p404_p12 }
  0x61   : > { %414 = shalt.err (!%p411_p10)
}
  0x62   : > { %s415_s5 = scalar_lea.hbm %s650_s29, 128  ;;  %s419_s18 = scalar_lea.hbm %s694_s2, 256 }
  0x63   : > { %p416_p1 = scmp.ne.s32.totalorder %s650_s29, %s415_s5  ;;  %p420_p3 = scmp.lt.u32.totalorder %s650_s29, %s694_s2 }
  0x64   : > { %p421_p4 = scmp.lt.u32.totalorder %s419_s18, %s415_s5  ;;  %p423_p11 = scmp.lt.u32.totalorder %s415_s5, %s650_s29 }
  0x65   : > { %p417_p2 = pnand %p416_p1, %p583_p8 }
  0x66   : > { %p422_p6 = por %p421_p4, %p420_p3 }
  0x67   : > { %p418_p7 = pneg %p417_p2 }
  0x68   : > { %p424_p9 = por %p423_p11, %p422_p6 }
  0x6a   : > { %p425_p12 = pnand %p424_p9, %p418_p7 }
  0x6c   : > { %428 = shalt.err (!%p425_p12)
}
  0x6d   : > { %292 = dma.vmem_to_hbm [thread:$0]  (%p583_p8), %s645_s19, 128, %s650_s29, %s177_s15  }
  0x6e PF: > { %s202_s25 = sand.u32 1, %s459_s9   ;;  %p713_p13 = scmp.ne.s32.totalorder %s699_s16, 0 }
  0x6f   : > { %p714_p0 = scmp.ge.s32.totalorder %s471_s12, 2  ;;  %s203_s23 = scalar_lea.sflag [#allocation4], %s202_s25 }
  0x71   : > { %p303_p5 = pnand %p714_p0, %p713_p13 }
  0x73   : > { %454 = dma.done.wait (!%p303_p5), %s203_s23, 128  }
  0x74   : > { %456 = vsyncadd (!%p303_p5), %s203_s23, 4294967168  ;;  %p16_p10 = scmp.ge.s32.totalorder %s539_s20, 4   ;;  %s715_s9 = smov %s463_s10 }
  0x75   : > { %s716_s10 = smov %s467_s11  ;;  %s717_s11 = smov %s575_s7 }
  0x76   : > { %s718_s12 = smov %s539_s20  ;;  %18 = sbr.rel (!%p16_p10) target bundleno = 6 (0x6), region = 78 }
  0x7d   :  { %208 = vsyncpa [#allocation3], 1 }
  0x7e   :  { %210 = vsyncpa [#allocation3 + $0x1], 1 }
  0x7f   :  { %211 = vsyncpa [#allocation6], 1 }
  0x80   :  { %213 = vsyncpa [#allocation6 + $0x1], 1 }
  0x81   :  { %214 = vsyncpa [#allocation4], 1 }
  0x82   :  { %216 = vsyncpa [#allocation4 + $0x1], 1 }

// kernel: tpu_custom_call.1
= control target key start
LH: loop header
LB: loop body
LE: loop exit
PB: predicated region body
PF: predicated region fallthrough
CT: control target
= control target key end

     0   :  { %12 = vsyncpa [#allocation3], 0  ;;  %s1687_s0 = inlined_call_operand.hbm [shape: f32[2,8,32], index: 0, kind: input, shape index: {}]   ;;  %s1688_s1 = inlined_call_operand.hbm [shape: f32[2,32], index: 1, kind: input, shape index: {}]   ;;  %s1689_s2 = inlined_call_operand.hbm [shape: bf16[32,96], index: 2, kind: input, shape index: {}]   ;;  %s1690_s3 = inlined_call_operand.hbm [shape: f32[1,96], index: 3, kind: input, shape index: {}]   ;;  %s1691_s4 = inlined_call_operand.hbm [shape: bf16[2,4,8,8], index: 4, kind: output, shape index: {0}]   ;;  %s1692_s5 = inlined_call_operand.hbm [shape: bf16[2,4,8,8], index: 5, kind: output, shape index: {1}]   ;;  %s1693_s6 = inlined_call_operand.hbm [shape: bf16[2,4,8,8], index: 6, kind: output, shape index: {2}]  }
   0x1   :  { %14 = vsyncpa [#allocation3 + $0x1], 0 }
   0x2   :  { %15 = vsyncpa [#allocation6], 0 }
   0x3   :  { %16 = vsyncpa [#allocation9], 0 }
   0x4   :  { %17 = vsyncpa [#allocation4], 0 }
   0x5   :  { %19 = vsyncpa [#allocation4 + $0x1], 0 }
   0x6   :  { %20 = vsyncpa [#allocation12], 0 }
   0x7   :  { %22 = vsyncpa [#allocation12 + $0x1], 0  ;;  %s1321_s21 = smov 0   ;;  %s1323_s22 = smov 0  }
   0x8   :  { %s1325_s23 = smov 0   ;;  %s1327_s24 = smov 0  }
   0x9 LB: > { %s1342_s25 = sadd.s32 4294967295, %s1261_s24   ;;  %s1697_s26 = sadd.s32 4294967294, %s1261_s24   ;;  %s1261_s24 = sphi %s1327_s24, %s1722_s24   ;;  %s1257_s23 = sphi %s1325_s23, %s1721_s23   ;;  %s1253_s22 = sphi %s1323_s22, %s1720_s22   ;;  %s1249_s21 = sphi %s1321_s21, %s1719_s21  }
   0xa   : > { %p48_p0 = scmp.ne.s32.totalorder %s1253_s22, %s1249_s21  ;;  %p1694_p1 = scmp.eq.s32.totalorder %s1342_s25, 0 }
   0xb   : > { %p141_p3 = scmp.eq.s32.totalorder %s1697_s26, 1  ;;  %p840_p5 = scmp.ge.s32.totalorder %s1261_s24, 1 }
   0xc   : > { %p1353_p4 = por %p1694_p1, %p48_p0  ;;  %p200_p7 = scmp.lt.s32.totalorder %s1261_s24, 3 }
   0xd   : > { %p1358_p6 = por %p141_p3, %p48_p0  ;;  %s1263_s30 = smov [#allocation5]  }
   0xe   : > { %s1700_s27 = scalar_select %p1353_p4, 1, 0 }
   0xf   : > { %s1701_s28 = scalar_select %p1358_p6, 1, 0 }
  0x10   : > { %p1363_p8 = pnand %p840_p5, %p200_p7  ;;  %s213_s7 = sshll.u32 %s1263_s30, 4  ;;  %s214_s7 = int_to_ptr.vmem [resolvable:$true] %s213_s7 }
  0x11   : > { %s1264_s8 = smov [#allocation7]   ;;  %s1265_s11 = smov [#allocation8]  }
  0x12   : > { %s1702_s29 = scalar_select %p1363_p8, 1, 0 }
  0x13   : > { %p917_p10 = pneg %p1363_p8  ;;  %s223_s9 = sshll.u32 %s1264_s8, 4  ;;  %s1376_s9 = int_to_ptr.vmem [resolvable:$true] %s223_s9 }
  0x14   : > { %s1378_s12 = sshll.u32 %s1265_s11, 4  ;;  %s1013_s15 = scalar_lea.hbm %s1688_s1, 32  ;;  %s238_s12 = int_to_ptr.vmem [resolvable:$true] %s1378_s12 }
  0x15   : > { %p1372_p11 = pnand %p917_p10, %p1694_p1  ;;  %p1014_p12 = scmp.ne.s32.totalorder %s1688_s1, %s1013_s15 }
  0x16   : > { %p1020_p5 = scmp.lt.u32.totalorder %s1013_s15, %s1688_s1 }
  0x17   : > { %p1388_p13 = pneg %p1372_p11 }
  0x19   : > { %p1016_p0 = pnand %p1388_p13, %p1014_p12 }
  0x1b   : > { %p1017_p3 = pneg %p1016_p0 }
  0x1d   : > { %p1022_p7 = pnand %p1020_p5, %p1017_p3 }
  0x1f   : > { %1025 = shalt.err (!%p1022_p7)
}
  0x20   : > { %s1026_s30 = scalar_lea.vmem %s214_s7, 32  ;;  %p1034_p2 = scmp.lt.s32.totalorder %s214_s7, %s214_s7 }
  0x21   : > { %p1027_p10 = scmp.ne.s32.totalorder %s214_s7, %s1026_s30  ;;  %p1035_p6 = scmp.lt.s32.totalorder %s1026_s30, %s1026_s30 }
  0x23   : > { %p1029_p9 = pnand %p1027_p10, %p1388_p13  ;;  %p1036_p4 = por %p1035_p6, %p1034_p2 }
  0x25   : > { %p1030_p1 = pneg %p1029_p9 }
  0x27   : > { %p1037_p8 = pnand %p1036_p4, %p1030_p1 }
  0x29   : > { %1040 = shalt.err (!%p1037_p8)
}
  0x2a   : > { %920 = dma.hbm_to_vmem [thread:$0]  (!%p1372_p11), %s1688_s1, 32, %s214_s7, [#allocation6]  }
  0x2b   : > { %s1041_s15 = scalar_lea.hbm %s1689_s2, 256 }
  0x2c   : > { %p1042_p9 = scmp.ne.s32.totalorder %s1689_s2, %s1041_s15  ;;  %p1048_p1 = scmp.lt.u32.totalorder %s1041_s15, %s1689_s2 }
  0x2e   : > { %p1044_p12 = pnand %p1042_p9, %p1388_p13 }
  0x30   : > { %p1045_p2 = pneg %p1044_p12 }
  0x32   : > { %p1050_p4 = pnand %p1048_p1, %p1045_p2 }
  0x34   : > { %1053 = shalt.err (!%p1050_p4)
}
  0x35   : > { %s1054_s7 = scalar_lea.vmem %s1376_s9, 256  ;;  %p1062_p3 = scmp.lt.s32.totalorder %s1376_s9, %s1376_s9 }
  0x36   : > { %p1055_p6 = scmp.ne.s32.totalorder %s1376_s9, %s1054_s7  ;;  %p1063_p5 = scmp.lt.s32.totalorder %s1054_s7, %s1054_s7 }
  0x38   : > { %p1057_p8 = pnand %p1055_p6, %p1388_p13  ;;  %p1064_p7 = por %p1063_p5, %p1062_p3 }
  0x3a   : > { %p1058_p0 = pneg %p1057_p8 }
  0x3c   : > { %p1065_p10 = pnand %p1064_p7, %p1058_p0 }
  0x3e   : > { %1068 = shalt.err (!%p1065_p10)
}
  0x3f   : > { %s1266_s30 = smov 64   ;;  %s1267_s8 = smov 4  }
  0x40   : > { %923 = dma.hbm_to_vmem [thread:$0]  (!%p1372_p11), %s1689_s2, 256, %s1376_s9, [#allocation6], %s1266_s30, %s1266_s30, %s1267_s8  }
  0x41   : > { %s1069_s16 = scalar_lea.hbm %s1690_s3, 16 }
  0x42   : > { %p1070_p9 = scmp.ne.s32.totalorder %s1690_s3, %s1069_s16  ;;  %p1076_p1 = scmp.lt.u32.totalorder %s1069_s16, %s1690_s3 }
  0x44   : > { %p1072_p12 = pnand %p1070_p9, %p1388_p13 }
  0x46   : > { %p1073_p2 = pneg %p1072_p12 }
  0x48   : > { %p1078_p4 = pnand %p1076_p1, %p1073_p2 }
  0x4a   : > { %1081 = shalt.err (!%p1078_p4)
}
  0x4b   : > { %s1082_s11 = scalar_lea.vmem %s238_s12, 16  ;;  %s1089_s9 = scalar_lea.vmem %s238_s12, 32 }
  0x4c   : > { %p1083_p6 = scmp.ne.s32.totalorder %s238_s12, %s1082_s11  ;;  %p1090_p3 = scmp.lt.s32.totalorder %s238_s12, %s238_s12 }
  0x4d   : > { %p1091_p5 = scmp.lt.s32.totalorder %s1089_s9, %s1082_s11 }
  0x4e   : > { %p1085_p8 = pnand %p1083_p6, %p1388_p13 }
  0x4f   : > { %p1092_p7 = por %p1091_p5, %p1090_p3 }
  0x50   : > { %p1086_p0 = pneg %p1085_p8 }
  0x52   : > { %p1093_p10 = pnand %p1092_p7, %p1086_p0 }
  0x54   : > { %1096 = shalt.err (!%p1093_p10)
}
  0x55   : > { %926 = dma.hbm_to_vmem [thread:$0]  (!%p1372_p11), %s1690_s3, 16, %s238_s12, [#allocation9]  }
  0x56   : > { %s1447_s18 = sadd.s32 1, %s1261_s24   ;;  %s35_s10 = sadd.s32 1, %s1257_s23 }
  0x57   : > { %s32_s13 = ssub.s32 %s1261_s24, %s1447_s18  ;;  %p42_p9 = scmp.ne.s32.totalorder %s1257_s23, %s1253_s22 }
  0x58   : > { %p33_p13 = scmp.eq.s32.totalorder %s32_s13, 0  ;;  %p43_p12 = scmp.eq.s32.totalorder %s1261_s24, 0 }
  0x59   : > { %p944_p2 = scmp.lt.s32.totalorder %s1261_s24, 2  ;;  %p1705_p4 = scmp.eq.s32.totalorder %s1342_s25, 1 }
  0x5a   : > { %s1457_s14 = scalar_select %p33_p13, %s1257_s23, %s35_s10  }
  0x5b   : > { %p44_p1 = por %p43_p12, %p42_p9  ;;  %p1461_p6 = por %p1705_p4, %p42_p9 }
  0x5c   : > { %s248_s16 = sand.u32 1, %s1257_s23   ;;  %s846_s17 = sshll.u32 %s1261_s24, 7 }
  0x5d   : > { %s845_s12 = sshll.u32 %s248_s16, 3  ;;  %s1470_s7 = scalar_lea.hbm %s1687_s0, %s846_s17 }
  0x5e   : > { %s252_s11 = scalar_lea.vmem [#allocation2], %s845_s12  ;;  %p1472_p11 = pnand %p944_p2, %p44_p1 }
  0x5f   : > { %s259_s9 = sshll.u32 %s252_s11, 4  ;;  %s249_s8 = scalar_lea.sflag [#allocation3], %s248_s16  ;;  %s1476_s9 = int_to_ptr.vmem [resolvable:$true] %s259_s9 }
  0x60   : > { %s1097_s13 = scalar_lea.hbm %s1470_s7, 128  ;;  %p1099_p0 = pneg %p1472_p11 }
  0x61   : > { %p1098_p8 = scmp.ne.s32.totalorder %s1470_s7, %s1097_s13  ;;  %s1102_s12 = scalar_lea.hbm %s1687_s0, 256 }
  0x62   : > { %p1103_p7 = scmp.lt.u32.totalorder %s1470_s7, %s1687_s0  ;;  %p1104_p10 = scmp.lt.u32.totalorder %s1102_s12, %s1097_s13 }
  0x63   : > { %p1100_p3 = pnand %p1099_p0, %p1098_p8  ;;  %p1106_p9 = scmp.lt.u32.totalorder %s1097_s13, %s1470_s7 }
  0x64   : > { %p1105_p13 = por %p1104_p10, %p1103_p7 }
  0x65   : > { %p1101_p5 = pneg %p1100_p3 }
  0x66   : > { %p1107_p12 = por %p1106_p9, %p1105_p13 }
  0x68   : > { %p1108_p2 = pnand %p1107_p12, %p1101_p5 }
  0x6a   : > { %1111 = shalt.err (!%p1108_p2)
}
  0x6b   : > { %s1112_s16 = scalar_lea.vmem %s1476_s9, 128  ;;  %s1268_s11 = smov [#allocation2]  }
  0x6c   : > { %p1113_p1 = scmp.ne.s32.totalorder %s1476_s9, %s1112_s16  ;;  %s1117_s10 = sshll.u32 %s1268_s11, 4  ;;  %s1118_s10 = int_to_ptr.vmem [resolvable:$false] %s1117_s10 }
  0x6d   : > { %s1119_s17 = scalar_lea.vmem %s1118_s10, 256  ;;  %p1120_p3 = scmp.lt.s32.totalorder %s1476_s9, %s1118_s10 }
  0x6e   : > { %p1115_p4 = pnand %p1113_p1, %p1099_p0  ;;  %p1121_p7 = scmp.lt.s32.totalorder %s1119_s17, %s1112_s16 }
  0x70   : > { %p1116_p8 = pneg %p1115_p4  ;;  %p1122_p10 = por %p1121_p7, %p1120_p3 }
  0x72   : > { %p1123_p13 = pnand %p1122_p10, %p1116_p8 }
  0x74   : > { %1126 = shalt.err (!%p1123_p13)
}
  0x75   : > { %930 = dma.hbm_to_vmem [thread:$0]  (!%p1472_p11), %s1470_s7, 128, %s1476_s9, %s249_s8  }
  0x76   : > { %p1708_p5 = scmp.ne.s32.totalorder %s1702_s29, 0 }
  0x77   : > { %s1506_s13 = sand.u32 (!%p1708_p5), 1, %s1253_s22   ;;  %p1709_p0 = scmp.ne.s32.totalorder (!%p1708_p5), %s1700_s27, 0 }
  0x78   : > { %268 = sbr.rel (%p1708_p5) target bundleno = 995 (0x3e3), region = 36  ;;  %s848_s12 = sshll.u32 (!%p1708_p5), %s1506_s13, 3 }
  0x79   : > { %s271_s19 = scalar_lea.sflag (!%p1708_p5), [#allocation3], %s1506_s13  ;;  %s274_s20 = scalar_lea.vmem (!%p1708_p5), [#allocation2], %s848_s12 }
  0x7f   : > { %1228 = dma.done.wait (%p1709_p0), %s271_s19, 128  }
  0x80   : > { %1230 = vsyncadd (%p1709_p0), %s271_s19, 4294967168  ;;  %p1710_p9 = scmp.eq.s32.totalorder %s1342_s25, 0 }
  0x82   : > { %1232 = dma.done.wait (%p1710_p9), [#allocation6], 288   ;;  %p1711_p11 = pmov %p1710_p9 }
  0x83   : > { %p1712_p12 = pmov %p1710_p9 }
  0x84   : > { %1234 = vsyncadd (%p1711_p11), [#allocation6], 4294967008 }
  0x85   : > { %1236 = dma.done.wait (%p1712_p12), [#allocation9], 16   ;;  %p1713_p2 = pmov %p1710_p9 }
  0x86   : > { %vm329_vm0 = vcmask 261120   ;;  %v326_v0 = vld [vmem:[%s274_s20] sm:$0xff]  ;;  %v1007_v7 = vld [vmem:[#allocation7] sm:$0xff]   ;;  %v1269_v8 = vmov 0.0   ;;  %vm1270_vm1 = vmmov 0   ;;  %s1526_s27 = sshll.u32 %s1506_s13, 4 }
  0x87   : > { %1238 = vsyncadd (%p1713_p2), [#allocation9], 4294967280  ;;  %v330_v1 = vsel %vm329_vm0, %v326_v0, 0.0  ;;  %889 = vmatprep.subr.bf16.mxu0 %v1269_v8  ;;  %893 = vmatprep.mubr.msk.bf16.mxu0 %vm1270_vm1, %v1269_v8  ;;  %v1008_v9 = vld [vmem:[#allocation7 + $0x8] sm:$0xff]   ;;  %v855_v19 = vld [vmem:[#allocation5] ss:$0 sm:$0xff] }
  0x88   : > { %331 = vadd.xlane.f32.xlu0 %v330_v1  ;;  %890 = vmatpush3.bf16.msra.mxu0 %v1007_v7  ;;  %v856_v21 = vld [vmem:[#allocation5 + $0x1] ss:$0 sm:$0xff]  ;;  %v857_v25 = vld [vmem:[#allocation8] ss:$0 sm:$0xff]  ;;  %vm429_vm4 = vcmask 60416   ;;  %s1271_s29 = smov 88  }
  0x89   : > { %891 = vmatprep.subr.bf16.mxu0 %v1269_v8  ;;  %s1272_s7 = smov 96   ;;  %s1529_s9 = scalar_lea.vmem [#allocation10], %s1526_s27 }
  0x8a   : > { %s1273_s30 = smov 80   ;;  %s1274_s8 = smov 72  }
  0x8b   : > { %s1275_s16 = smov 56   ;;  %s1698_s11 = smov 64  }
  0x8c   : > { %892 = vmatpush3.bf16.msra.mxu0 %v1008_v9  ;;  %s1277_s10 = smov 112   ;;  %s1278_s17 = smov 120  }
  0x8d   : > { %s1535_s12 = scalar_lea.vmem [#allocation13], %s1526_s27  ;;  %s1279_s19 = smov 48  }
  0x8e   : > { %s1280_s20 = smov 104  }
 0x115   : > { %v332_v2 = vpop.xlane.xlu0 %331 }
 0x116   : > { %v334_v3 = vmul.f32 0.03125, %v332_v2 }
 0x118   : > { %v335_v4 = vsub.f32 %v326_v0, %v334_v3 }
 0x11a   : > { %v336_v5 = vmul.f32 %v335_v4, %v335_v4 }
 0x11c   : > { %v337_v6 = vsel %vm329_vm0, %v336_v5, 0.0 }
 0x11d   : > { %338 = vadd.xlane.f32.xlu0 %v337_v6 }
 0x1aa   : > { %v339_v10 = vpop.xlane.xlu0 %338 }
 0x1ab   : > { %v340_v11 = vmul.f32 0.032258064, %v339_v10 }
 0x1ad   : > { %1009 = vrsqrt.f32 %v340_v11  ;;  %vm343_vm2 = vcmp.eq.f32.partialorder %v340_v11, inf  ;;  %v346_v14 = vand.u32 2147483648, %v340_v11  ;;  %vm345_vm3 = vcmp.eq.f32.partialorder %v340_v11, 0.0 }
 0x1b7   : > { %v1010_v12 = vpop.eup %1009 }
 0x1b8   : > { %v342_v13 = vmul.f32 %v1010_v12, %v340_v11 }
 0x1ba   : > { %v344_v15 = vsel %vm343_vm2, %v340_v11, %v342_v13 }
 0x1bb   : > { %v347_v16 = vsel %vm345_vm3, %v346_v14, %v344_v15 }
 0x1bc   : > { %v348_v17 = vadd.f32 1e-06, %v347_v16 }
 0x1be   : > { %1011 = vrcp.f32 %v348_v17 }
 0x1c8   : > { %v1012_v18 = vpop.eup %1011 }
 0x1c9   : > { %v350_v20 = vmul.f32 %v1012_v18, %v335_v4 }
 0x1cb   : > { %v355_v22 = vmul.f32 %v855_v19, %v350_v20 }
 0x1cd   : > { %v360_v23 = vadd.f32 %v856_v21, %v355_v22 }
 0x1cf   : > { %v361_v24 = vpack.c.bf16 %v360_v23, %v360_v23 }
 0x1d1   : > { %894 = vmatmul.mubr.msk.bf16.vlgmr.msra.gmra.mrb[0].mxu0 %vm329_vm0, %v361_v24 }
 0x2a4   : > { %v422_v26 = vpop.f32.mrb[0].mxu0 }
 0x2a5   : > { %v423_v27 = vadd.f32 %v857_v25, %v422_v26  ;;  %v895_v28 = vpop.f32.mrb[1].mxu0 }
 0x2a6   : > { %v425_v29 = vpop.f32.mrb[2].mxu0 }
 0x2a7   : > { %v428_v30 = vpack.c.bf16 %v423_v27, %v423_v27  ;;  %481 = vrot.lane.b32.xlu0 %v423_v27, %s1271_s29  ;;  %432 = vrot.lane.b32.xlu1 %v423_v27, %s1272_s7  ;;  %v896_v31 = vpop.f32.mrb[3].mxu0  ;;  %s1281_s29 = smov 40   ;;  %s317_s7 = scalar_lea.vmem [#allocation11], %s1526_s27 }
 0x2a9   : > { %430 = vst.msk [vmem:[%s1529_s9] sm:$0xf] %vm429_vm4, %v428_v30 }
 0x2ab   : > { %529 = vrot.lane.b32.xlu0 %v423_v27, %s1273_s30  ;;  %577 = vrot.lane.b32.xlu1 %v423_v27, %s1274_s8  ;;  %s660_s30 = sshll.u32 %s317_s7, 4  ;;  %s625_s8 = sand.u32 1, %s1342_s25   ;;  %s1552_s30 = int_to_ptr.vmem [resolvable:$true] %s660_s30 }
 0x2af   : > { %519 = vrot.lane.b32.xlu1 %v428_v30, %s1275_s16  ;;  %472 = vrot.lane.b32.xlu0 %v428_v30, %s1698_s11  ;;  %s1550_s16 = sshll.u32 %s1342_s25, 8  ;;  %s1562_s25 = scalar_lea.sflag [#allocation12], %s625_s8 }
 0x2b3   : > { %524 = vrot.lane.b32.xlu1 %v428_v30, %s1277_s10  ;;  %476 = vrot.lane.b32.xlu0 %v428_v30, %s1278_s17  ;;  %s1558_s17 = scalar_lea.hbm %s1692_s5, %s1550_s16 }
 0x319   : > { %v482_v32 = vpop.permute.xlu0 %481  ;;  %v433_v33 = vpop.permute.xlu1 %432 }
 0x31a   : > { %435 = vxpose.xlu1.b32.start.end [1/1] (short) (narrow) %v433_v33, 8  ;;  %484 = vxpose.xlu0.b32.start.end [1/1] (short) (narrow) %v482_v32, 8 }
 0x31d   : > { %v530_v34 = vpop.permute.xlu0 %529  ;;  %v578_v35 = vpop.permute.xlu1 %577 }
 0x31e   : > { %v1000_v36 = vpack.i.bf16 %v578_v35, %v530_v34 }
 0x320   : > { %1001 = vxpose.xlu1.b32.start.end [1/1] (short) (narrow) %v1000_v36, 8 }
 0x321   : > { %v520_v37 = vpop.permute.xlu1 %519  ;;  %v473_v38 = vpop.permute.xlu0 %472 }
 0x322   : > { %864 = vst.msk [vmem:[%s1535_s12 + $0x4] sm:$0xf] %vm429_vm4, %v520_v37  ;;  %475 = vst.msk [vmem:[%s1535_s12] sm:$0xf] %vm429_vm4, %v473_v38 }
 0x325   : > { %v525_v39 = vpop.permute.xlu1 %524  ;;  %v477_v40 = vpop.permute.xlu0 %476 }
 0x326   : > { %865 = vst.msk [vmem:[%s1529_s9 + $0x8] sm:$0xf] %vm429_vm4, %v525_v39  ;;  %862 = vst.msk [vmem:[%s1529_s9 + $0x4] sm:$0xf] %vm429_vm4, %v477_v40 }
 0x343   : > { %567 = vrot.lane.b32.xlu0 %v428_v30, %s1279_s19  ;;  %s1127_s19 = scalar_lea.vmem %s1552_s30, 256 }
 0x344   : > { %p1128_p1 = scmp.ne.s32.totalorder %s1552_s30, %s1127_s19 }
 0x346   : > { %p1129_p4 = pnand %p1128_p1, %p1461_p6 }
 0x347   : > { %572 = vrot.lane.b32.xlu0 %v428_v30, %s1280_s20  ;;  %s1282_s20 = smov [#allocation11]  }
 0x348   : > { %p1130_p8 = pneg %p1129_p4 }
 0x34b   : > { %615 = vrot.lane.b32.xlu0 %v428_v30, %s1281_s29  ;;  %s1131_s29 = sshll.u32 %s1282_s20, 4  ;;  %s1132_s29 = int_to_ptr.vmem [resolvable:$false] %s1131_s29 }
 0x34c   : > { %s1133_s26 = scalar_lea.vmem %s1132_s29, 512  ;;  %p1134_p3 = scmp.lt.s32.totalorder %s1552_s30, %s1132_s29 }
 0x34d   : > { %p1135_p7 = scmp.lt.s32.totalorder %s1133_s26, %s1127_s19 }
 0x34f   : > { %p1136_p10 = por %p1135_p7, %p1134_p3 }
 0x351   : > { %p1137_p13 = pnand %p1136_p10, %p1130_p8 }
 0x39a   : > { %v500_v41 = vpop.trf.xlu0  ;;  %v451_v42 = vpop.trf.xlu1 }
 0x39b   : > { %v516_v43 = vpack.c.bf16 %v500_v41, %v500_v41  ;;  %v467_v44 = vpack.c.bf16 %v451_v42, %v451_v42 }
 0x39d   : > { %863 = vst.msk [vmem:[%s317_s7 + $0x4] sm:$0xf] %vm429_vm4, %v516_v43  ;;  %468 = vst.msk [vmem:[%s317_s7] sm:$0xf] %vm429_vm4, %v467_v44 }
 0x3a0   : > { %v1002_v45 = vpop.trf.xlu1 }
 0x3a1   : > { %v1006_v46 = vunpack.i.h.bf16 %v1002_v45  ;;  %v1003_v47 = vunpack.i.l.bf16 %v1002_v45 }
 0x3a3   : > { %v612_v48 = vpack.c.bf16 %v1006_v46, %v1006_v46  ;;  %v564_v49 = vpack.c.bf16 %v1003_v47, %v1003_v47 }
 0x3a5   : > { %869 = vst.msk [vmem:[%s317_s7 + $0xc] sm:$0xf] %vm429_vm4, %v612_v48  ;;  %866 = vst.msk [vmem:[%s317_s7 + $0x8] sm:$0xf] %vm429_vm4, %v564_v49 }
 0x3a6   : > { %1140 = shalt.err (!%p1137_p13)
}
 0x3a7   : > { %s1141_s7 = scalar_lea.hbm %s1558_s17, 256  ;;  %s1145_s10 = scalar_lea.hbm %s1692_s5, 512 }
 0x3a8   : > { %p1142_p5 = scmp.ne.s32.totalorder %s1558_s17, %s1141_s7  ;;  %p1146_p11 = scmp.lt.u32.totalorder %s1558_s17, %s1692_s5 }
 0x3a9   : > { %p1147_p12 = scmp.lt.u32.totalorder %s1145_s10, %s1141_s7  ;;  %p1149_p1 = scmp.lt.u32.totalorder %s1141_s7, %s1558_s17 }
 0x3aa   : > { %p1143_p0 = pnand %p1142_p5, %p1461_p6 }
 0x3ab   : > { %p1148_p2 = por %p1147_p12, %p1146_p11 }
 0x3ac   : > { %p1144_p9 = pneg %p1143_p0 }
 0x3ad   : > { %p1150_p4 = por %p1149_p1, %p1148_p2 }
 0x3af   : > { %p1151_p8 = pnand %p1150_p4, %p1144_p9 }
 0x3b1   : > { %1154 = shalt.err (!%p1151_p8)
}
 0x3b2   : > { %s1283_s26 = smov 4   ;;  %s644_s19 = sshll.u32 %s1529_s9, 4  ;;  %s1592_s19 = int_to_ptr.vmem [resolvable:$true] %s644_s19 }
 0x3b3   : > { %912 = dma.vmem_to_hbm [thread:$0]  (%p1461_p6), %s1552_s30, 256, %s1558_s17, %s1562_s25, %s1698_s11, %s1698_s11, %s1283_s26  }
 0x3b4   : > { %s1598_s27 = scalar_lea.hbm %s1691_s4, %s1550_s16  ;;  %s621_s20 = scalar_lea.sflag [#allocation4], %s1506_s13 }
 0x3b5   : > { %v568_v50 = vpop.permute.xlu0 %567  ;;  %s1155_s30 = scalar_lea.vmem %s1592_s19, 256  ;;  %s1284_s17 = smov [#allocation10]  }
 0x3b6   : > { %867 = vst.msk [vmem:[%s1535_s12 + $0x8] sm:$0xf] %vm429_vm4, %v568_v50  ;;  %p1156_p3 = scmp.ne.s32.totalorder %s1592_s19, %s1155_s30  ;;  %s1159_s29 = sshll.u32 %s1284_s17, 4  ;;  %s1160_s29 = int_to_ptr.vmem [resolvable:$false] %s1159_s29 }
 0x3b7   : > { %s1161_s11 = scalar_lea.vmem %s1160_s29, 512  ;;  %p1162_p13 = scmp.lt.s32.totalorder %s1592_s19, %s1160_s29 }
 0x3b8   : > { %p1157_p7 = pnand %p1156_p3, %p1461_p6  ;;  %p1163_p5 = scmp.lt.s32.totalorder %s1161_s11, %s1155_s30 }
 0x3b9   : > { %v573_v51 = vpop.permute.xlu0 %572 }
 0x3ba   : > { %868 = vst.msk [vmem:[%s1529_s9 + $0xc] sm:$0xf] %vm429_vm4, %v573_v51  ;;  %p1158_p10 = pneg %p1157_p7  ;;  %p1164_p0 = por %p1163_p5, %p1162_p13 }
 0x3bc   : > { %p1165_p9 = pnand %p1164_p0, %p1158_p10 }
 0x3be   : > { %1168 = shalt.err (!%p1165_p9)
}
 0x3bf   : > { %s1169_s9 = scalar_lea.hbm %s1598_s27, 256  ;;  %s1173_s17 = scalar_lea.hbm %s1691_s4, 512 }
 0x3c0   : > { %p1170_p11 = scmp.ne.s32.totalorder %s1598_s27, %s1169_s9  ;;  %p1174_p1 = scmp.lt.u32.totalorder %s1598_s27, %s1691_s4 }
 0x3c1   : > { %p1175_p4 = scmp.lt.u32.totalorder %s1173_s17, %s1169_s9  ;;  %p1177_p3 = scmp.lt.u32.totalorder %s1169_s9, %s1598_s27 }
 0x3c2   : > { %p1171_p12 = pnand %p1170_p11, %p1461_p6 }
 0x3c3   : > { %p1176_p8 = por %p1175_p4, %p1174_p1 }
 0x3c4   : > { %p1172_p2 = pneg %p1171_p12 }
 0x3c5   : > { %p1178_p7 = por %p1177_p3, %p1176_p8 }
 0x3c7   : > { %p1179_p10 = pnand %p1178_p7, %p1172_p2 }
 0x3c9   : > { %1182 = shalt.err (!%p1179_p10)
}
 0x3ca   : > { %s1714_s11 = smov 64   ;;  %s1715_s10 = sshll.u32 %s1535_s12, 4  ;;  %v616_v52 = vpop.permute.xlu0 %615  ;;  %s1632_s10 = int_to_ptr.vmem [resolvable:$true] %s1715_s10 }
 0x3cb   : > { %911 = dma.vmem_to_hbm [thread:$0]  (%p1461_p6), %s1592_s19, 256, %s1598_s27, %s621_s20, %s1714_s11, %s1714_s11, %s1283_s26  }
 0x3cc   : > { %s1638_s7 = scalar_lea.hbm %s1693_s6, %s1550_s16  ;;  %870 = vst.msk [vmem:[%s1535_s12 + $0xc] sm:$0xf] %vm429_vm4, %v616_v52  ;;  %s1183_s13 = scalar_lea.vmem %s1632_s10, 256 }
 0x3cd   : > { %p1184_p13 = scmp.ne.s32.totalorder %s1632_s10, %s1183_s13  ;;  %s1285_s19 = smov [#allocation13]  }
 0x3ce   : > { %s1187_s27 = sshll.u32 %s1285_s19, 4  ;;  %s1188_s27 = int_to_ptr.vmem [resolvable:$false] %s1187_s27 }
 0x3cf   : > { %p1185_p5 = pnand %p1184_p13, %p1461_p6  ;;  %s1189_s20 = scalar_lea.vmem %s1188_s27, 512 }
 0x3d0   : > { %p1190_p9 = scmp.lt.s32.totalorder %s1632_s10, %s1188_s27  ;;  %p1191_p11 = scmp.lt.s32.totalorder %s1189_s20, %s1183_s13 }
 0x3d1   : > { %p1186_p0 = pneg %p1185_p5 }
 0x3d2   : > { %p1192_p12 = por %p1191_p11, %p1190_p9 }
 0x3d4   : > { %p1193_p2 = pnand %p1192_p12, %p1186_p0 }
 0x3d6   : > { %1196 = shalt.err (!%p1193_p2)
}
 0x3d7   : > { %s1197_s12 = scalar_lea.hbm %s1638_s7, 256  ;;  %s1201_s17 = scalar_lea.hbm %s1693_s6, 512 }
 0x3d8   : > { %p1198_p1 = scmp.ne.s32.totalorder %s1638_s7, %s1197_s12  ;;  %p1202_p3 = scmp.lt.u32.totalorder %s1638_s7, %s1693_s6 }
 0x3d9   : > { %p1203_p7 = scmp.lt.u32.totalorder %s1201_s17, %s1197_s12  ;;  %p1205_p13 = scmp.lt.u32.totalorder %s1197_s12, %s1638_s7 }
 0x3da   : > { %p1199_p4 = pnand %p1198_p1, %p1461_p6 }
 0x3db   : > { %p1204_p10 = por %p1203_p7, %p1202_p3 }
 0x3dc   : > { %p1200_p8 = pneg %p1199_p4 }
 0x3dd   : > { %p1206_p5 = por %p1205_p13, %p1204_p10 }
 0x3df   : > { %p1207_p0 = pnand %p1206_p5, %p1200_p8 }
 0x3e1   : > { %1210 = shalt.err (!%p1207_p0)
}
 0x3e2   : > { %913 = dma.vmem_to_hbm [thread:$0]  (%p1461_p6), %s1632_s10, 256, %s1638_s7, %s1562_s25, %s1714_s11, %s1714_s11, %s1283_s26  }
 0x3e3 PF: > { %s691_s9 = sand.u32 1, %s1249_s21   ;;  %p1716_p9 = scmp.ne.s32.totalorder %s1701_s28, 0 }
 0x3e4   : > { %p1717_p11 = scmp.ge.s32.totalorder %s1261_s24, 2  ;;  %s692_s13 = scalar_lea.sflag [#allocation4], %s691_s9 }
 0x3e6   : > { %p932_p12 = pnand %p1717_p11, %p1716_p9 }
 0x3e8   : > { %1240 = dma.done.wait (!%p932_p12), %s692_s13, 256  }
 0x3e9   : > { %1242 = vsyncadd (!%p932_p12), %s692_s13, 4294967040  ;;  %s1718_s15 = sadd.s32 4294967294, %s1261_s24  }
 0x3ea   : > { %s700_s19 = sand.u32 1, %s1718_s15  }
 0x3eb   : > { %s701_s27 = scalar_lea.sflag [#allocation12], %s700_s19 }
 0x3ec   : > { %1244 = dma.done.wait (!%p932_p12), %s701_s27, 512  }
 0x3ed   : > { %1246 = vsyncadd (!%p932_p12), %s701_s27, 4294966784  ;;  %p25_p6 = scmp.ge.s32.totalorder %s1447_s18, 4   ;;  %s1719_s21 = smov %s1253_s22 }
 0x3ee   : > { %s1720_s22 = smov %s1257_s23  ;;  %s1721_s23 = smov %s1457_s14 }
 0x3ef   : > { %s1722_s24 = smov %s1447_s18  ;;  %27 = sbr.rel (!%p25_p6) target bundleno = 9 (0x9), region = 134 }
 0x3f6   :  { %715 = vsyncpa [#allocation3], 1 }
 0x3f7   :  { %717 = vsyncpa [#allocation3 + $0x1], 1 }
 0x3f8   :  { %718 = vsyncpa [#allocation6], 1 }
 0x3f9   :  { %719 = vsyncpa [#allocation9], 1 }
 0x3fa   :  { %720 = vsyncpa [#allocation4], 1 }
 0x3fb   :  { %722 = vsyncpa [#allocation4 + $0x1], 1 }
 0x3fc   :  { %723 = vsyncpa [#allocation12], 1 }
 0x3fd   :  { %725 = vsyncpa [#allocation12 + $0x1], 1 }

</bundles_post_ra>
